<compile_context>
chip_gen: v6e
topology: v6e:2x2x1
jax: 0.10.0
libtpu: 0.0.40
codegen_flags: <defaults>
</compile_context>

<pallas_src>
import jax
import jax.numpy as jnp
from jax.experimental import pallas as pl
from jax.experimental.pallas import tpu as pltpu


# ---------------------------------------------------------------------------
# Fused Pallas kernel: conv-as-GEMM + InstanceNorm + LeakyReLU
# ---------------------------------------------------------------------------
def _fused_conv_in_lrelu_kernel(cols_ref, w_ref, o_ref, acc_ref):
    # cols_ref: (tk, HW)  bf16 im2col patches (channel-major rows) of ONE image
    # w_ref:    (tc, tk)  bf16 conv weights
    # o_ref:    (tc, HW)  f32  normalized + activated output (already NCHW row-major)
    # acc_ref:  (tc, HW)  f32  VMEM accumulator, resident across the K grid axis
    k = pl.program_id(2)

    @pl.when(k == 0)
    def _():
        acc_ref[...] = jnp.zeros_like(acc_ref)

    acc_ref[...] += jnp.dot(w_ref[...], cols_ref[...],
                            preferred_element_type=jnp.float32)

    @pl.when(k == pl.num_programs(2) - 1)
    def _():
        y = acc_ref[...]
        # InstanceNorm2d(affine=False), biased variance, eps=1e-5 — one-pass stats.
        inv_n = jnp.float32(1.0 / y.shape[1])
        mean = jnp.sum(y, axis=1, keepdims=True) * inv_n
        ex2 = jnp.sum(y * y, axis=1, keepdims=True) * inv_n
        rstd = jax.lax.rsqrt(ex2 - mean * mean + jnp.float32(1e-5))
        yn = y * rstd - mean * rstd            # fused FMA-style normalize
        # LeakyReLU(0.2)
        o_ref[...] = jnp.where(yn >= 0.0, yn, jnp.float32(0.2) * yn)


# ---------------------------------------------------------------------------
# Helpers
# ---------------------------------------------------------------------------
def _largest_aligned_divisor(total, target, align):
    """Largest divisor of `total` that is <= target and a multiple of `align`.
    Falls back to `total` (no tiling) if none exists."""
    if total <= target:
        return total
    t = (target // align) * align
    while t >= align:
        if total % t == 0:
            return t
        t -= align
    return total


# ---------------------------------------------------------------------------
# Module forward (public interface stays NCHW, like the PyTorch module)
# ---------------------------------------------------------------------------
def encoderconv2_forward(x_nchw, params):
    B, Cin, H, W = x_nchw.shape
    w4 = params["w"]                                   # (Cout, Cin, 4, 4)
    Cout = w4.shape[0]
    Ho, Wo = (H + 2 - 4) // 2 + 1, (W + 2 - 4) // 2 + 1
    HW, K = Ho * Wo, 16 * Cin

    # --- im2col (pure XLA data movement), channel-major rows, bf16 -----------
    # Row order of cols axis-1 is (cin, kh, kw) with kw fastest, matching
    # w4.reshape(Cout, Cin*16) exactly. No NCHW<->NHWC transpose anywhere.
    xp = jnp.pad(x_nchw.astype(jnp.bfloat16), ((0, 0), (0, 0), (1, 1), (1, 1)))
    taps = [xp[:, :, kh:kh + 2 * Ho:2, kw:kw + 2 * Wo:2]
            for kh in range(4) for kw in range(4)]      # 16 x (B, Cin, Ho, Wo)
    cols = jnp.stack(taps, axis=2).reshape(B, K, HW)    # (B, Cin*16, Ho*Wo), bf16

    wm = w4.reshape(Cout, K).astype(jnp.bfloat16)       # (Cout, K)
    # Bias dropped on purpose: InstanceNorm(affine=False) cancels it exactly.

    # --- tiling ---------------------------------------------------------------
    tc = _largest_aligned_divisor(Cout, 256, 8)         # output-row tile (sublane mult of 8)
    tk = _largest_aligned_divisor(K, 512, 128)          # reduction tile (lane mult of 128)
    grid = (B, Cout // tc, K // tk)

    out = pl.pallas_call(
        _fused_conv_in_lrelu_kernel,
        out_shape=jax.ShapeDtypeStruct((B, Cout, HW), jnp.float32),
        grid_spec=pltpu.PrefetchScalarGridSpec(
            num_scalar_prefetch=0,
            grid=grid,
            in_specs=[
                pl.BlockSpec((None, tk, HW), lambda b, c, k: (b, k, 0)),   # patches
                pl.BlockSpec((tc, tk), lambda b, c, k: (c, k)),            # weights
            ],
            out_specs=pl.BlockSpec((None, tc, HW), lambda b, c, k: (b, c, 0)),
            scratch_shapes=[pltpu.VMEM((tc, HW), jnp.float32)],
        ),
        compiler_params=pltpu.CompilerParams(
            dimension_semantics=("parallel", "parallel", "arbitrary"),
            vmem_limit_bytes=64 * 1024 * 1024,
        ),
    )(cols, wm)

    # Output is already channel-major: just reshape to NCHW. No transpose pass.
    return out.reshape(B, Cout, Ho, Wo)


# ---------------------------------------------------------------------------
# Pure-JAX f32 reference (includes the bias, verifying it is absorbed by IN)
# ---------------------------------------------------------------------------
def _reference(x_nchw, params):
    dn = jax.lax.conv_dimension_numbers(x_nchw.shape, params["w"].shape,
                                        ("NCHW", "OIHW", "NCHW"))
    y = jax.lax.conv_general_dilated(x_nchw, params["w"], window_strides=(2, 2),
                                     padding=((1, 1), (1, 1)), dimension_numbers=dn)
    y = y + params["b"].reshape(1, -1, 1, 1)
    mean = jnp.mean(y, axis=(2, 3), keepdims=True)
    var = jnp.mean(jnp.square(y - mean), axis=(2, 3), keepdims=True)
    yn = (y - mean) / jnp.sqrt(var + 1e-5)
    return jnp.where(yn >= 0.0, yn, 0.2 * yn)


# ---------------------------------------------------------------------------
# Deterministic synthetic init (Conv2d(in_ch, ou_ch, 4, stride=2, pad=1))
# ---------------------------------------------------------------------------
def init_params(key, in_ch, ou_ch):
    kw, kb = jax.random.split(key)
    scale = 1.0 / jnp.sqrt(jnp.float32(in_ch * 16))
    w = scale * jax.random.normal(kw, (ou_ch, in_ch, 4, 4), jnp.float32)
    b = scale * jax.random.normal(kb, (ou_ch,), jnp.float32)
    return {"w": w, "b": b}


if __name__ == "__main__":
    in_ch, ou_ch = 4, 32
    B, H, W = 2, 16, 16

    key = jax.random.PRNGKey(0)
    kx, kp = jax.random.split(key)
    x = jax.random.normal(kx, (B, in_ch, H, W), jnp.float32)
    params = init_params(kp, in_ch, ou_ch)

    out = jax.block_until_ready(encoderconv2_forward(x, params))

    assert out.shape == (B, ou_ch, H // 2, W // 2)
    assert bool(jnp.all(jnp.isfinite(out)))

    ref = _reference(x, params)
    max_err = float(jnp.max(jnp.abs(out - ref)))
    assert bool(jnp.allclose(out, ref, atol=5e-2, rtol=5e-2)), max_err

    print("KERNEL_OK")
</pallas_src>

<mosaic_0001>
module attributes {stable_mosaic.version = 11 : i64} {
  func.func @_fused_conv_in_lrelu_kernel(%arg0: i32, %arg1: i32, %arg2: i32, %arg3: memref<1x64x64xbf16, #tpu.memory_space<vmem>>, %arg4: memref<32x64xbf16, #tpu.memory_space<vmem>>, %arg5: memref<1x32x64xf32, #tpu.memory_space<vmem>>, %arg6: memref<32x64xf32, #tpu.memory_space<vmem>>) attributes {dimension_semantics = [#tpu.dimension_semantics<parallel>, #tpu.dimension_semantics<parallel>, #tpu.dimension_semantics<arbitrary>], iteration_bounds = array<i64: 2, 1, 1>, scalar_prefetch = 0 : i64, scratch_operands = 1 : i64, tpu.core_type = #tpu.core_type<tc>, window_params = [{transform_indices = @transform_0, window_bounds = array<i64: 1, 64, 64>}, {transform_indices = @transform_1, window_bounds = array<i64: 32, 64>}, {transform_indices = @transform_2, window_bounds = array<i64: 1, 32, 64>}]} {
    %c0_i32 = arith.constant 0 : i32
    %0 = arith.cmpi eq, %arg2, %c0_i32 : i32
    %1 = arith.extui %0 : i1 to i32
    %c0_i32_0 = arith.constant 0 : i32
    %2 = arith.cmpi ne, %1, %c0_i32_0 : i32
    scf.if %2 {
      %cst_11 = arith.constant 0.000000e+00 : f32
      %13 = vector.broadcast %cst_11 : f32 to vector<32x64xf32>
      %c0_12 = arith.constant 0 : index
      %c0_13 = arith.constant 0 : index
      %14 = vector.load %arg6[%c0_12, %c0_13] : memref<32x64xf32, #tpu.memory_space<vmem>>, vector<32x64xf32>
      tpu.vector_store %arg6[%c0_12, %c0_13], %13 {strides = array<i32>} : memref<32x64xf32, #tpu.memory_space<vmem>>, vector<32x64xf32>,
    } else {
    }
    %c0 = arith.constant 0 : index
    %c0_1 = arith.constant 0 : index
    %3 = vector.load %arg6[%c0, %c0_1] : memref<32x64xf32, #tpu.memory_space<vmem>>, vector<32x64xf32>
    %c0_2 = arith.constant 0 : index
    %c0_3 = arith.constant 0 : index
    %4 = vector.load %arg4[%c0_2, %c0_3] : memref<32x64xbf16, #tpu.memory_space<vmem>>, vector<32x64xbf16>
    %c0_4 = arith.constant 0 : index
    %c0_5 = arith.constant 0 : index
    %c0_6 = arith.constant 0 : index
    %5 = vector.load %arg3[%c0_4, %c0_5, %c0_6] : memref<1x64x64xbf16, #tpu.memory_space<vmem>>, vector<1x64x64xbf16>
    %6 = vector.shape_cast %5 : vector<1x64x64xbf16> to vector<64x64xbf16>
    %cst = arith.constant dense<0.000000e+00> : vector<32x64xf32>
    %7 = tpu.matmul %4, %6, %cst {dimension_numbers = #tpu.dot_dimension_numbers<[1], [0], [0], [1], [0, 0, 1, 1], [], []>} : vector<32x64xbf16>, vector<64x64xbf16>, vector<32x64xf32> -> vector<32x64xf32>
    %8 = arith.addf %3, %7 : vector<32x64xf32>
    %c0_7 = arith.constant 0 : index
    %c0_8 = arith.constant 0 : index
    %9 = vector.load %arg6[%c0_7, %c0_8] : memref<32x64xf32, #tpu.memory_space<vmem>>, vector<32x64xf32>
    tpu.vector_store %arg6[%c0_7, %c0_8], %8 {strides = array<i32>} : memref<32x64xf32, #tpu.memory_space<vmem>>, vector<32x64xf32>,
    %c0_i32_9 = arith.constant 0 : i32
    %10 = arith.cmpi eq, %arg2, %c0_i32_9 : i32
    %11 = arith.extui %10 : i1 to i32
    %c0_i32_10 = arith.constant 0 : i32
    %12 = arith.cmpi ne, %11, %c0_i32_10 : i32
    scf.if %12 {
      %c0_11 = arith.constant 0 : index
      %c0_12 = arith.constant 0 : index
      %13 = vector.load %arg6[%c0_11, %c0_12] : memref<32x64xf32, #tpu.memory_space<vmem>>, vector<32x64xf32>
      %cst_13 = arith.constant dense<0.000000e+00> : vector<32xf32>
      %14 = vector.multi_reduction <add>, %13, %cst_13 [1] : vector<32x64xf32> to vector<32xf32>
      %15 = vector.shape_cast %14 : vector<32xf32> to vector<32x1xf32>
      %cst_14 = arith.constant 1.562500e-02 : f32
      %16 = vector.broadcast %cst_14 : f32 to vector<32x1xf32>
      %17 = arith.mulf %15, %16 : vector<32x1xf32>
      %18 = arith.mulf %13, %13 : vector<32x64xf32>
      %cst_15 = arith.constant dense<0.000000e+00> : vector<32xf32>
      %19 = vector.multi_reduction <add>, %18, %cst_15 [1] : vector<32x64xf32> to vector<32xf32>
      %20 = vector.shape_cast %19 : vector<32xf32> to vector<32x1xf32>
      %cst_16 = arith.constant 1.562500e-02 : f32
      %21 = vector.broadcast %cst_16 : f32 to vector<32x1xf32>
      %22 = arith.mulf %20, %21 : vector<32x1xf32>
      %23 = arith.mulf %17, %17 : vector<32x1xf32>
      %24 = arith.subf %22, %23 : vector<32x1xf32>
      %cst_17 = arith.constant 9.99999974E-6 : f32
      %25 = vector.broadcast %cst_17 : f32 to vector<32x1xf32>
      %26 = arith.addf %24, %25 : vector<32x1xf32>
      %27 = math.rsqrt %26 : vector<32x1xf32>
      %28 = vector.broadcast %27 : vector<32x1xf32> to vector<32x64xf32>
      %29 = arith.mulf %13, %28 : vector<32x64xf32>
      %30 = arith.mulf %17, %27 : vector<32x1xf32>
      %31 = vector.broadcast %30 : vector<32x1xf32> to vector<32x64xf32>
      %32 = arith.subf %29, %31 : vector<32x64xf32>
      %cst_18 = arith.constant 0.000000e+00 : f32
      %33 = vector.broadcast %cst_18 : f32 to vector<32x64xf32>
      %34 = arith.cmpf oge, %32, %33 : vector<32x64xf32>
      %cst_19 = arith.constant 2.000000e-01 : f32
      %35 = vector.broadcast %cst_19 : f32 to vector<32x64xf32>
      %36 = arith.mulf %35, %32 : vector<32x64xf32>
      %37 = arith.select %34, %32, %36 : vector<32x64xi1>, vector<32x64xf32>
      %c0_20 = arith.constant 0 : index
      %c0_21 = arith.constant 0 : index
      %c0_22 = arith.constant 0 : index
      %38 = vector.load %arg5[%c0_20, %c0_21, %c0_22] : memref<1x32x64xf32, #tpu.memory_space<vmem>>, vector<1x32x64xf32>
      %39 = vector.shape_cast %38 : vector<1x32x64xf32> to vector<32x64xf32>
      %40 = vector.shape_cast %37 : vector<32x64xf32> to vector<1x32x64xf32>
      tpu.vector_store %arg5[%c0_20, %c0_21, %c0_22], %40 {strides = array<i32>} : memref<1x32x64xf32, #tpu.memory_space<vmem>>, vector<1x32x64xf32>,
    } else {
    }
    return
  }
  func.func @transform_0(%arg0: i32, %arg1: i32, %arg2: i32) -> (i32, i32, i32) {
    %c0_i32 = arith.constant 0 : i32
    %c0_i32_0 = arith.constant 0 : i32
    return %arg0, %arg2, %c0_i32 : i32, i32, i32
  }
  func.func @transform_1(%arg0: i32, %arg1: i32, %arg2: i32) -> (i32, i32) {
    %c0_i32 = arith.constant 0 : i32
    return %arg1, %arg2 : i32, i32
  }
  func.func @transform_2(%arg0: i32, %arg1: i32, %arg2: i32) -> (i32, i32, i32) {
    %c0_i32 = arith.constant 0 : i32
    %c0_i32_0 = arith.constant 0 : i32
    return %arg0, %arg1, %c0_i32 : i32, i32, i32
  }
}

</mosaic_0001>

<bundles_post_ra>
// kernel: tpu_custom_call.1
= control target key start
LH: loop header
LB: loop body
LE: loop exit
PB: predicated region body
PF: predicated region fallthrough
CT: control target
= control target key end

     0   :  { %7 = vsyncpa [#allocation4], 0  ;;  %s1072_s0 = inlined_call_operand.hbm [shape: bf16[2,64,64], index: 0, kind: input, shape index: {}]   ;;  %s1073_s1 = inlined_call_operand.hbm [shape: bf16[32,64], index: 1, kind: input, shape index: {}]   ;;  %s1074_s2 = inlined_call_operand.hbm [shape: f32[2,32,64], index: 2, kind: output, shape index: {}]  }
   0x1   :  { %9 = vsyncpa [#allocation4 + $0x1], 0 }
   0x2   :  { %10 = vsyncpa [#allocation7], 0 }
   0x3   :  { %11 = vsyncpa [#allocation5], 0 }
   0x4   :  { %13 = vsyncpa [#allocation5 + $0x1], 0  ;;  %s847_s9 = smov 0   ;;  %s849_s10 = smov 0  }
   0x5   :  { %s851_s11 = smov 0   ;;  %s853_s12 = smov 0  }
   0x6   :  { %s855_s13 = smov 0   ;;  %s857_s14 = smov 0  }
   0x7 LB: > { %s547_s15 = sadd.s32 4294967295, %s822_s14   ;;  %s548_s16 = sadd.s32 4294967294, %s822_s14   ;;  %s822_s14 = sphi %s857_s14, %s19_s14   ;;  %s818_s13 = sphi %s855_s13, %s1094_s13   ;;  %s814_s12 = sphi %s853_s12, %s1093_s12   ;;  %s810_s11 = sphi %s851_s11, %s1092_s11   ;;  %s806_s10 = sphi %s849_s10, %s1091_s10   ;;  %s802_s9 = sphi %s847_s9, %s1090_s9  }
   0x8   : > { %p60_p0 = scmp.ne.s32.totalorder %s806_s10, %s802_s9  ;;  %p881_p1 = scmp.eq.s32.totalorder %s547_s15, 0 }
   0x9   : > { %p885_p2 = scmp.eq.s32.totalorder %s547_s15, 1  ;;  %p120_p3 = scmp.eq.s32.totalorder %s548_s16, 1 }
   0xa   : > { %p891_p4 = por %p881_p1, %p60_p0  ;;  %p549_p5 = scmp.ge.s32.totalorder %s822_s14, 1 }
   0xb   : > { %p896_p6 = por %p120_p3, %p60_p0  ;;  %p127_p7 = scmp.lt.s32.totalorder %s822_s14, 3 }
   0xc   : > { %s1079_s19 = scalar_select %p891_p4, 1, 0 }
   0xd   : > { %s1080_s20 = scalar_select %p896_p6, 1, 0 }
   0xe   : > { %p901_p8 = pnand %p549_p5, %p127_p7  ;;  %s824_s22 = smov [#allocation6]  }
   0xf   : > { %s143_s23 = sshll.u32 %s824_s22, 4  ;;  %s38_s25 = sadd.s32 1, %s818_s13  ;;  %s144_s23 = int_to_ptr.vmem [resolvable:$true] %s143_s23 }
  0x10   : > { %p600_p9 = pneg %p901_p8  ;;  %s695_s26 = scalar_lea.vmem %s144_s23, 256 }
  0x11   : > { %p696_p13 = scmp.ne.s32.totalorder %s144_s23, %s695_s26  ;;  %p703_p5 = scmp.lt.s32.totalorder %s144_s23, %s144_s23 }
  0x12   : > { %p910_p11 = pnand %p600_p9, %p881_p1  ;;  %p704_p7 = scmp.lt.s32.totalorder %s695_s26, %s695_s26 }
  0x14   : > { %p686_p12 = pneg %p910_p11  ;;  %p705_p6 = por %p704_p7, %p703_p5 }
  0x16   : > { %p698_p0 = pnand %p696_p13, %p686_p12 }
  0x18   : > { %p699_p3 = pneg %p698_p0 }
  0x1a   : > { %p706_p4 = pnand %p705_p6, %p699_p3 }
  0x1c   : > { %709 = shalt.err (!%p706_p4)
}
  0x1d   : > { %s1076_s27 = smov 64   ;;  %s826_s28 = smov 4  }
  0x1e   : > { %603 = dma.hbm_to_vmem [thread:$0]  (!%p910_p11), %s1073_s1, 256, %s144_s23, [#allocation7], %s1076_s27, %s1076_s27, %s826_s28  }
  0x1f   : > { %p40_p4 = scmp.ge.s32.totalorder %s38_s25, 2  ;;  %s47_s3 = sadd.s32 1, %s810_s11 }
  0x20   : > { %p54_p6 = scmp.ne.s32.totalorder %s810_s11, %s806_s10  ;;  %p55_p9 = scmp.eq.s32.totalorder %s822_s14, 0 }
  0x21   : > { %s1096_s25 = smov (%p40_p4, %s38_s25), 0  ;;  %p613_p0 = scmp.lt.s32.totalorder %s822_s14, 2 }
  0x22   : > { %p931_p12 = por %p55_p9, %p54_p6  ;;  %p937_p13 = por %p885_p2, %p54_p6 }
  0x23   : > { %s42_s6 = ssub.s32 %s818_s13, %s1096_s25  ;;  %s157_s7 = sand.u32 1, %s810_s11  }
  0x24   : > { %p45_p11 = scmp.eq.s32.totalorder %s42_s6, 0  ;;  %s552_s8 = sshll.u32 %s157_s7, 5 }
  0x25   : > { %s572_s16 = sshll.u32 %s818_s13, 9  ;;  %s161_s26 = scalar_lea.vmem [#allocation3], %s552_s8 }
  0x26   : > { %s946_s15 = scalar_select %p45_p11, %s810_s11, %s47_s3  }
  0x27   : > { %s169_s24 = scalar_lea.hbm %s1072_s0, %s572_s16  ;;  %s170_s29 = sshll.u32 %s161_s26, 4  ;;  %s171_s29 = int_to_ptr.vmem [resolvable:$true] %s170_s29 }
  0x28   : > { %p954_p2 = pnand %p613_p0, %p931_p12  ;;  %s158_s30 = scalar_lea.sflag [#allocation4], %s157_s7 }
  0x29   : > { %s723_s6 = scalar_lea.vmem %s171_s29, 512  ;;  %s827_s3 = smov [#allocation3]  }
  0x2a   : > { %p712_p3 = pneg %p954_p2  ;;  %p724_p5 = scmp.ne.s32.totalorder %s171_s29, %s723_s6 }
  0x2b   : > { %s728_s27 = sshll.u32 %s827_s3, 4  ;;  %s729_s27 = int_to_ptr.vmem [resolvable:$false] %s728_s27 }
  0x2c   : > { %p726_p7 = pnand %p724_p5, %p712_p3  ;;  %s730_s16 = scalar_lea.vmem %s729_s27, 1024 }
  0x2d   : > { %p731_p6 = scmp.lt.s32.totalorder %s171_s29, %s729_s27  ;;  %p732_p9 = scmp.lt.s32.totalorder %s730_s16, %s723_s6 }
  0x2e   : > { %p727_p4 = pneg %p726_p7 }
  0x2f   : > { %p733_p11 = por %p732_p9, %p731_p6 }
  0x31   : > { %p734_p10 = pnand %p733_p11, %p727_p4 }
  0x33   : > { %737 = shalt.err (!%p734_p10)
}
  0x34   : > { %s1086_s4 = smov 64   ;;  %182 = sbr.rel (%p901_p8) target bundleno = 474 (0x1da), region = 28 }
  0x35   : > { %607 = dma.hbm_to_vmem [thread:$0]  (!%p954_p2), %s169_s24, 512, %s171_s29, %s158_s30, %s1086_s4, %s1086_s4, %s826_s28  }
  0x36   : > { %s968_s7 = sand.u32 (!%p901_p8), 1, %s806_s10   ;;  %p1087_p10 = scmp.ne.s32.totalorder (!%p901_p8), %s1079_s19, 0 }
  0x37   : > { %s556_s27 = sshll.u32 (!%p901_p8), %s968_s7, 5  ;;  %s185_s8 = scalar_lea.sflag (!%p901_p8), [#allocation4], %s968_s7 }
  0x38   : > { %s188_s22 = scalar_lea.vmem (!%p901_p8), [#allocation3], %s556_s27 }
  0x39   : > { %789 = dma.done.wait (%p1087_p10), %s185_s8, 512  }
  0x3a   : > { %791 = vsyncadd (%p1087_p10), %s185_s8, 4294966784 }
  0x3b   : > { %793 = dma.done.wait (%p881_p1), [#allocation7], 256  }
  0x3c   : > { %795 = vsyncadd (%p881_p1), [#allocation7], 4294967040  ;;  %vm221_vm0 = vcmask 523264   ;;  %v828_v0 = vmov 0.0   ;;  %v670_v1 = vld [vmem:[%s188_s22 + $0x18] sm:$0xff]   ;;  %v671_v2 = vld [vmem:[%s188_s22 + $0x10] sm:$0xff]  }
  0x3d   : > { %224 = vst.msk [vmem:[#allocation2 + $0x10] sm:$0xff] %vm221_vm0, %v828_v0  ;;  %222 = vst.msk [vmem:[#allocation2] sm:$0xff] %vm221_vm0, %v828_v0  ;;  %580 = vmatprep.subr.bf16.mxu0 %v670_v1  ;;  %v672_v3 = vld [vmem:[%s188_s22 + $0x8] sm:$0xff]   ;;  %v674_v4 = vld [vmem:[#allocation6] sm:$0xff]   ;;  %s212_s17 = scalar_lea.vmem [#allocation8], %s556_s27  ;;  %s573_s19 = sshll.u32 %s814_s12, 9 }
  0x3e   : > { %223 = vst.msk [vmem:[#allocation2 + $0x8] sm:$0xff] %vm221_vm0, %v828_v0  ;;  %225 = vst.msk [vmem:[#allocation2 + $0x18] sm:$0xff] %vm221_vm0, %v828_v0  ;;  %581 = vmatpush3.bf16.msra.mxu0 %v670_v1  ;;  %588 = vmatprep.mubr.msk.bf16.mxu0 %vm221_vm0, %v674_v4  ;;  %v673_v5 = vld [vmem:[%s188_s22] sm:$0xff]   ;;  %v675_v6 = vld [vmem:[#allocation6 + $0x8] sm:$0xff]   ;;  %s443_s21 = sshll.u32 %s212_s17, 4  ;;  %s1019_s24 = scalar_lea.hbm %s1074_s2, %s573_s19  ;;  %s1021_s21 = int_to_ptr.vmem [resolvable:$true] %s443_s21 }
  0x3f   : > { %582 = vmatprep.subr.bf16.mxu0 %v671_v2  ;;  %s428_s12 = scalar_lea.sflag [#allocation5], %s968_s7  ;;  %s738_s26 = scalar_lea.vmem %s1021_s21, 512 }
  0x40   : > { %p739_p1 = scmp.ne.s32.totalorder %s1021_s21, %s738_s26  ;;  %s829_s29 = smov [#allocation8]  }
  0x41   : > { %s742_s18 = sshll.u32 %s829_s29, 4  ;;  %s743_s18 = int_to_ptr.vmem [resolvable:$false] %s742_s18 }
  0x42   : > { %583 = vmatpush3.bf16.msra.mxu0 %v671_v2  ;;  %p740_p8 = pnand %p739_p1, %p937_p13  ;;  %s744_s30 = scalar_lea.vmem %s743_s18, 1024 }
  0x43   : > { %584 = vmatprep.subr.bf16.mxu0 %v672_v3  ;;  %p745_p0 = scmp.lt.s32.totalorder %s1021_s21, %s743_s18  ;;  %p746_p2 = scmp.lt.s32.totalorder %s744_s30, %s738_s26 }
  0x44   : > { %v228_v7 = vld [vmem:[#allocation2 + $0x10] sm:$0xff]  ;;  %v226_v9 = vld [vmem:[#allocation2] sm:$0xff]  ;;  %p741_p12 = pneg %p740_p8 }
  0x45   : > { %v229_v12 = vld [vmem:[#allocation2 + $0x18] sm:$0xff]  ;;  %v227_v15 = vld [vmem:[#allocation2 + $0x8] sm:$0xff]  ;;  %p747_p3 = por %p746_p2, %p745_p0 }
  0x46   : > { %585 = vmatpush3.bf16.msra.mxu0 %v672_v3 }
  0x47   : > { %586 = vmatprep.subr.bf16.mxu0 %v673_v5  ;;  %p748_p5 = pnand %p747_p3, %p741_p12 }
  0x4a   : > { %587 = vmatpush3.bf16.msra.mxu0 %v673_v5 }
  0x4d   : > { %589 = vmatmul.mubr.msk.bf16.vlgmr.msra.gmra.mxu0 %vm221_vm0, %v675_v6 }
 0x10d   : > { %v590_v8 = vpop.f32.mrf.mxu0 }
 0x10e   : > { %v334_v10 = vadd.f32 %v590_v8, %v228_v7 }
 0x10f   : > { %v317_v11 = vpop.f32.mrf.mxu0 }
 0x110   : > { %338 = vst.msk [vmem:[#allocation2 + $0x10] sm:$0xff] %vm221_vm0, %v334_v10  ;;  %v332_v13 = vadd.f32 %v317_v11, %v226_v9 }
 0x111   : > { %v591_v14 = vpop.f32.mrf.mxu0 }
 0x112   : > { %336 = vst.msk [vmem:[#allocation2] sm:$0xff] %vm221_vm0, %v332_v13  ;;  %v335_v16 = vadd.f32 %v591_v14, %v229_v12 }
 0x113   : > { %v320_v17 = vpop.f32.mrf.mxu0 }
 0x114   : > { %339 = vst.msk [vmem:[#allocation2 + $0x18] sm:$0xff] %vm221_vm0, %v335_v16  ;;  %v333_v18 = vadd.f32 %v320_v17, %v227_v15 }
 0x116   : > { %337 = vst.msk [vmem:[#allocation2 + $0x8] sm:$0xff] %vm221_vm0, %v333_v18 }
 0x117   : > { %v992_v19 = vld [vmem:[#allocation2 + $0x10] sm:$0xff] }
 0x118   : > { %v353_v20 = vsel %vm221_vm0, %v992_v19, 0.0  ;;  %v365_v32 = vmul.f32 %v992_v19, %v992_v19 }
 0x119   : > { %354 = vadd.xlane.f32.xlu1 %v353_v20  ;;  %v343_v21 = vld [vmem:[#allocation2] sm:$0xff] }
 0x11a   : > { %v347_v22 = vsel %vm221_vm0, %v343_v21, 0.0  ;;  %v363_v23 = vmul.f32 %v343_v21, %v343_v21  ;;  %v373_v34 = vsel %vm221_vm0, %v365_v32, 0.0 }
 0x11b   : > { %348 = vadd.xlane.f32.xlu0 %v347_v22  ;;  %v997_v24 = vld [vmem:[#allocation2 + $0x18] sm:$0xff] }
 0x11c   : > { %v356_v25 = vsel %vm221_vm0, %v997_v24, 0.0  ;;  %v367_v27 = vsel %vm221_vm0, %v363_v23, 0.0  ;;  %v366_v30 = vmul.f32 %v997_v24, %v997_v24 }
 0x11d   : > { %357 = vadd.xlane.f32.xlu1 %v356_v25  ;;  %v344_v26 = vld [vmem:[#allocation2 + $0x8] sm:$0xff] }
 0x11e   : > { %v364_v28 = vmul.f32 %v344_v26, %v344_v26  ;;  %v350_v31 = vsel %vm221_vm0, %v344_v26, 0.0  ;;  %v376_v33 = vsel %vm221_vm0, %v366_v30, 0.0 }
 0x11f   : > { %368 = vadd.xlane.f32.xlu0 %v367_v27 }
 0x120   : > { %v370_v29 = vsel %vm221_vm0, %v364_v28, 0.0 }
 0x121   : > { %371 = vadd.xlane.f32.xlu1 %v370_v29 }
 0x123   : > { %351 = vadd.xlane.f32.xlu0 %v350_v31 }
 0x125   : > { %377 = vadd.xlane.f32.xlu1 %v376_v33 }
 0x127   : > { %374 = vadd.xlane.f32.xlu0 %v373_v34 }
 0x1a2   : > { %v355_v35 = vpop.xlane.xlu1 %354 }
 0x1a3   : > { %v361_v46 = vmul.f32 0.015625, %v355_v35 }
 0x1a4   : > { %v349_v36 = vpop.xlane.xlu0 %348 }
 0x1a5   : > { %v359_v37 = vmul.f32 0.015625, %v349_v36  ;;  %v385_v55 = vmul.f32 %v361_v46, %v361_v46 }
 0x1a6   : > { %v358_v38 = vpop.xlane.xlu1 %357 }
 0x1a7   : > { %v383_v40 = vmul.f32 %v359_v37, %v359_v37  ;;  %v362_v42 = vmul.f32 0.015625, %v358_v38 }
 0x1a8   : > { %v369_v39 = vpop.xlane.xlu0 %368 }
 0x1a9   : > { %v379_v41 = vmul.f32 0.015625, %v369_v39  ;;  %v386_v49 = vmul.f32 %v362_v42, %v362_v42 }
 0x1aa   : > { %v372_v43 = vpop.xlane.xlu1 %371 }
 0x1ab   : > { %v387_v44 = vsub.f32 %v379_v41, %v383_v40  ;;  %v380_v51 = vmul.f32 0.015625, %v372_v43 }
 0x1ac   : > { %v352_v45 = vpop.xlane.xlu0 %351 }
 0x1ad   : > { %v391_v47 = vadd.f32 1e-05, %v387_v44  ;;  %v360_v48 = vmul.f32 0.015625, %v352_v45 }
 0x1ae   : > { %v378_v50 = vpop.xlane.xlu1 %377 }
 0x1af   : > { %676 = vrsqrt.f32 %v391_v47  ;;  %v384_v52 = vmul.f32 %v360_v48, %v360_v48  ;;  %v382_v53 = vmul.f32 0.015625, %v378_v50 }
 0x1b0   : > { %v375_v54 = vpop.xlane.xlu0 %374 }
 0x1b1   : > { %v388_v56 = vsub.f32 %v380_v51, %v384_v52  ;;  %v390_v57 = vsub.f32 %v382_v53, %v386_v49  ;;  %v381_v58 = vmul.f32 0.015625, %v375_v54 }
 0x1b3   : > { %v392_v59 = vadd.f32 1e-05, %v388_v56  ;;  %v394_v60 = vadd.f32 1e-05, %v390_v57  ;;  %v389_v61 = vsub.f32 %v381_v58, %v385_v55 }
 0x1b5   : > { %678 = vrsqrt.f32 %v392_v59  ;;  %v393_v62 = vadd.f32 1e-05, %v389_v61 }
 0x1b6   : > { %680 = vrsqrt.f32 %v394_v60 }
 0x1b7   : > { %682 = vrsqrt.f32 %v393_v62 }
 0x1bc   : > { %v677_v63 = vpop.eup %676 }
 0x1bd   : > { %v399_v0 = vmul.f32 %v677_v63, %v343_v21  ;;  %v403_v1 = vmul.f32 %v677_v63, %v359_v37 }
 0x1bf   : > { %v407_v2 = vsub.f32 %v399_v0, %v403_v1 }
 0x1c1   : > { %vm411_vm1 = vcmp.ge.f32.partialorder %v407_v2, 0.0  ;;  %v415_v3 = vmul.f32 0.2, %v407_v2 }
 0x1c2   : > { %v679_v4 = vpop.eup %678 }
 0x1c3   : > { %v681_v5 = vpop.eup %680  ;;  %v419_v6 = vsel %vm411_vm1, %v407_v2, %v415_v3  ;;  %v400_v7 = vmul.f32 %v679_v4, %v344_v26  ;;  %v404_v8 = vmul.f32 %v679_v4, %v360_v48 }
 0x1c4   : > { %v683_v9 = vpop.eup %682  ;;  %423 = vst.msk [vmem:[%s212_s17] sm:$0xff] %vm221_vm0, %v419_v6  ;;  %v402_v10 = vmul.f32 %v681_v5, %v997_v24  ;;  %v406_v11 = vmul.f32 %v681_v5, %v362_v42 }
 0x1c5   : > { %v408_v12 = vsub.f32 %v400_v7, %v404_v8  ;;  %v401_v13 = vmul.f32 %v683_v9, %v992_v19  ;;  %v405_v14 = vmul.f32 %v683_v9, %v361_v46 }
 0x1c6   : > { %v410_v15 = vsub.f32 %v402_v10, %v406_v11 }
 0x1c7   : > { %vm412_vm2 = vcmp.ge.f32.partialorder %v408_v12, 0.0  ;;  %v416_v16 = vmul.f32 0.2, %v408_v12  ;;  %v409_v17 = vsub.f32 %v401_v13, %v405_v14 }
 0x1c8   : > { %vm414_vm3 = vcmp.ge.f32.partialorder %v410_v15, 0.0  ;;  %v418_v18 = vmul.f32 0.2, %v410_v15 }
 0x1c9   : > { %v420_v20 = vsel %vm412_vm2, %v408_v12, %v416_v16  ;;  %vm413_vm4 = vcmp.ge.f32.partialorder %v409_v17, 0.0  ;;  %v417_v21 = vmul.f32 0.2, %v409_v17 }
 0x1ca   : > { %424 = vst.msk [vmem:[%s212_s17 + $0x8] sm:$0xff] %vm221_vm0, %v420_v20  ;;  %v422_v19 = vsel %vm414_vm3, %v410_v15, %v418_v18 }
 0x1cb   : > { %426 = vst.msk [vmem:[%s212_s17 + $0x18] sm:$0xff] %vm221_vm0, %v422_v19  ;;  %v421_v22 = vsel %vm413_vm4, %v409_v17, %v417_v21 }
 0x1cc   : > { %425 = vst.msk [vmem:[%s212_s17 + $0x10] sm:$0xff] %vm221_vm0, %v421_v22 }
 0x1cd   : > { %751 = shalt.err (!%p748_p5)
}
 0x1ce   : > { %s752_s6 = scalar_lea.hbm %s1019_s24, 512  ;;  %s756_s4 = scalar_lea.hbm %s1074_s2, 1024 }
 0x1cf   : > { %p753_p7 = scmp.ne.s32.totalorder %s1019_s24, %s752_s6  ;;  %p757_p9 = scmp.lt.s32.totalorder %s1019_s24, %s1074_s2 }
 0x1d0   : > { %p758_p11 = scmp.lt.s32.totalorder %s756_s4, %s752_s6 }
 0x1d1   : > { %p754_p4 = pnand %p753_p7, %p937_p13 }
 0x1d2   : > { %p759_p10 = por %p758_p11, %p757_p9 }
 0x1d3   : > { %p755_p6 = pneg %p754_p4 }
 0x1d5   : > { %p760_p1 = pnand %p759_p10, %p755_p6 }
 0x1d7   : > { %763 = shalt.err (!%p760_p1)
}
 0x1d8   : > { %s830_s22 = smov 128   ;;  %s831_s17 = smov 8  }
 0x1d9   : > { %598 = dma.vmem_to_hbm [thread:$0]  (%p937_p13), %s1021_s21, 512, %s1019_s24, %s428_s12, %s830_s22, %s830_s22, %s831_s17  }
 0x1da PF: > { %s458_s19 = sand.u32 1, %s802_s9   ;;  %p1088_p8 = scmp.ne.s32.totalorder %s1080_s20, 0 }
 0x1db   : > { %p1089_p12 = scmp.ge.s32.totalorder %s822_s14, 2  ;;  %s459_s28 = scalar_lea.sflag [#allocation5], %s458_s19 }
 0x1dd   : > { %p609_p0 = pnand %p1089_p12, %p1088_p8 }
 0x1df   : > { %p610_p2 = pneg %p609_p0 }
 0x1e1   : > { %797 = dma.done.wait (%p610_p2), %s459_s28, 512  }
 0x1e2   : > { %799 = vsyncadd (%p610_p2), %s459_s28, 4294966784  ;;  %s19_s14 = sadd.s32 1, %s822_s14   ;;  %s1090_s9 = smov %s806_s10 }
 0x1e3   : > { %p16_p3 = scmp.ge.s32.totalorder %s19_s14, 4   ;;  %s1091_s10 = smov %s810_s11 }
 0x1e4   : > { %s1092_s11 = smov %s946_s15  ;;  %s1093_s12 = smov %s818_s13 }
 0x1e5   : > { %s1094_s13 = smov %s1096_s25  ;;  %18 = sbr.rel (!%p16_p3) target bundleno = 7 (0x7), region = 86 }
 0x1ea   :  { %464 = vsyncpa [#allocation4], 1 }
 0x1eb   :  { %466 = vsyncpa [#allocation4 + $0x1], 1 }
 0x1ec   :  { %467 = vsyncpa [#allocation7], 1 }
 0x1ed   :  { %468 = vsyncpa [#allocation5], 1 }
 0x1ee   :  { %470 = vsyncpa [#allocation5 + $0x1], 1 }

</bundles_post_ra>
